<compile_context>
chip_gen: v7x
topology: tpu7x:2x2x1
jax: 0.10.0
libtpu: 0.0.40
codegen_flags: <defaults>
</compile_context>

<pallas_src>
import functools

import numpy as np
import jax
import jax.numpy as jnp
from jax.experimental import pallas as pl
from jax.experimental.pallas import tpu as pltpu


def make_fir_kernel(k):
    """JAX port of StyleGAN2 make_kernel()."""
    k = jnp.asarray(k, dtype=jnp.float32)
    if k.ndim == 1:
        k = k[None, :] * k[:, None]
    k = k / jnp.sum(k)
    return k


# --------------------------------------------------------------------------- kernels


def _downsample_fused_kernel(x_ref, m_ref, o_ref):
    """Small-spatial path: one flat MXU matmul, lane-dense flat output slab.

    x_ref: (Ct, H*W) in input dtype; m_ref: (H*W, Ho*Wo) in input dtype.
    """
    o_ref[...] = jnp.dot(
        x_ref[...], m_ref[...], preferred_element_type=jnp.float32
    ).astype(o_ref.dtype)


def _downsample_twostage_kernel(x_ref, at_ref, b_ref, o_ref, *, num_terms):
    """Larger-spatial path: per rank term, two flat 2-D matmuls.

    x_ref:  (Ct, H, W)  input dtype (no f32 upcast — MXU operands stay narrow)
    at_ref: (R, H, Ho)  A_r^T,  b_ref: (R, W, Wo)  B_r   (input dtype)
    """
    x = x_ref[...]                                  # (Ct, H, W)
    ct, H, W = x.shape
    Ho = at_ref.shape[2]
    Wo = b_ref.shape[2]
    x2 = x.reshape(ct * H, W)                       # flat: M-dim = Ct*H >> MXU rows

    out = None
    for r in range(num_terms):                      # static; R == 1 for separable FIRs
        # stage 1: contract W           (Ct*H, W) @ (W, Wo) -> f32 (Ct*H, Wo)
        t = jnp.dot(x2, b_ref[r], preferred_element_type=jnp.float32)
        # minor-dim (XLU) transpose of the small f32 intermediate
        t = jnp.swapaxes(t.reshape(ct, H, Wo), 1, 2)          # (Ct, Wo, H)
        t = t.reshape(ct * Wo, H).astype(x.dtype)
        # stage 2: contract H           (Ct*Wo, H) @ (H, Ho) -> f32 (Ct*Wo, Ho)
        y = jnp.dot(t, at_ref[r], preferred_element_type=jnp.float32)
        y = jnp.swapaxes(y.reshape(ct, Wo, Ho), 1, 2)          # (Ct, Ho, Wo)
        out = y if out is None else out + y                    # no zero-init for R == 1

    o_ref[...] = out.astype(o_ref.dtype)


# --------------------------------------------------------------------------- wrapper


def _vmem_budgets():
    """Generation-aware VMEM limit and per-tile working-set budget."""
    try:
        cap = int(pltpu.get_tpu_info().vmem_capacity_bytes)
    except Exception:  # conservative fallback (v7x per-TC size)
        cap = 64 * 1024 * 1024
    vmem_limit = max(32 * 1024 * 1024, min(int(cap * 0.75), 112 * 1024 * 1024))
    tile_budget = int(vmem_limit * 0.45)
    return vmem_limit, tile_budget


def _pick_nc_block(NC, per_chan_bytes, fixed_bytes, tile_budget, min_steps, align):
    blk = (tile_budget - fixed_bytes) // max(per_chan_bytes, 1)
    blk = int(max(1, min(blk, NC)))
    # Keep the grid >= min_steps: both v7x TensorCores get work (grid axis is
    # "parallel") and the BlockSpec pipeline has iterations to overlap.
    blk = min(blk, max(1, -(-NC // min_steps)))
    if align > 1 and blk < NC:
        # second-minor dim of a 2-D block must be a multiple of 8 (or the full dim)
        blk = min(NC, max(align, (blk // align) * align))
    return int(blk)


def downsample(x, fir_kernel, factor=2, *, nc_block=None,
               fused_matrix_bytes_limit=4 * 1024 * 1024):
    """Equivalent of Downsample.forward(x). x: (N, C, H, W)."""
    N, C, H, W = x.shape

    # ---- compile-time geometry (upfirdn2d with up=1, down=factor) ----
    k = np.asarray(fir_kernel, dtype=np.float64)
    if k.ndim == 1:
        k = np.outer(k, k)
    kf = k[::-1, ::-1]                       # upfirdn2d correlates with flip(k)
    KH, KW = kf.shape
    p = KH - factor
    pad0, pad1 = (p + 1) // 2, p // 2
    Ho = (H + pad0 + pad1 - KH) // factor + 1
    Wo = (W + pad0 + pad1 - KW) // factor + 1

    NC = N * C
    isz = x.dtype.itemsize
    vmem_limit, tile_budget = _vmem_budgets()
    MIN_GRID_STEPS = 4

    use_fused = (H * W) * (Ho * Wo) * 4 <= fused_matrix_bytes_limit

    if use_fused:
        # ---- fold pad + flipped FIR + decimation into one (H*W, Ho*Wo) matrix ----
        M = np.zeros((H * W, Ho * Wo), np.float32)
        for i in range(Ho):
            for ky in range(KH):
                h = factor * i + ky - pad0
                if not (0 <= h < H):
                    continue
                for j in range(Wo):
                    for kx in range(KW):
                        w = factor * j + kx - pad0
                        if 0 <= w < W:
                            M[h * W + w, i * Wo + j] += kf[ky, kx]
        m = jnp.asarray(M, dtype=x.dtype)

        fixed = 2 * M.size * isz
        per_chan = isz * 2 * (H * W + Ho * Wo) + 4 * (Ho * Wo)
        blk = nc_block or _pick_nc_block(NC, per_chan, fixed, tile_budget,
                                         MIN_GRID_STEPS, align=8)

        x2 = x.reshape(NC, H * W)            # contiguous reshape: free in HBM
        out = pl.pallas_call(
            _downsample_fused_kernel,
            out_shape=jax.ShapeDtypeStruct((NC, Ho * Wo), x.dtype),
            grid_spec=pltpu.PrefetchScalarGridSpec(
                num_scalar_prefetch=0,
                grid=(pl.cdiv(NC, blk),),
                in_specs=[
                    pl.BlockSpec((blk, H * W), lambda i: (i, 0)),
                    pl.BlockSpec((H * W, Ho * Wo), lambda i: (0, 0)),
                ],
                out_specs=pl.BlockSpec((blk, Ho * Wo), lambda i: (i, 0)),
            ),
            compiler_params=pltpu.CompilerParams(
                dimension_semantics=("parallel",),
                vmem_limit_bytes=vmem_limit,
            ),
        )(x2, m)
        return out.reshape(N, C, Ho, Wo)

    # ---- larger spatial: rank-decomposed separable form ----
    U, S, Vt = np.linalg.svd(kf)
    R = max(1, int(np.sum(S > S[0] * 1e-7)))     # R == 1 for separable FIRs
    AT = np.zeros((R, H, Ho), np.float32)        # A_r^T  (H, Ho)
    B = np.zeros((R, W, Wo), np.float32)         # B_r    (W, Wo)
    for r in range(R):
        u = U[:, r] * S[r]
        v = Vt[r, :]
        for i in range(Ho):
            for ky in range(KH):
                h = factor * i + ky - pad0
                if 0 <= h < H:                   # out-of-range taps hit zero padding
                    AT[r, h, i] += u[ky]
        for j in range(Wo):
            for kx in range(KW):
                w = factor * j + kx - pad0
                if 0 <= w < W:
                    B[r, w, j] += v[kx]
    a_t = jnp.asarray(AT, dtype=x.dtype)
    b = jnp.asarray(B, dtype=x.dtype)

    fixed = 2 * isz * (AT.size + B.size)
    per_chan = (isz * 2 * (H * W + Ho * Wo)      # in/out tiles, double buffered
                + 4 * (2 * H * Wo + 2 * Ho * Wo)  # f32 intermediates (+ transposed copies)
                + isz * Wo * H)                   # downcast copy fed to 2nd matmul
    blk = nc_block or _pick_nc_block(NC, per_chan, fixed, tile_budget,
                                     MIN_GRID_STEPS, align=1)

    x3 = x.reshape(NC, H, W)
    out = pl.pallas_call(
        functools.partial(_downsample_twostage_kernel, num_terms=R),
        out_shape=jax.ShapeDtypeStruct((NC, Ho, Wo), x.dtype),
        grid_spec=pltpu.PrefetchScalarGridSpec(
            num_scalar_prefetch=0,
            grid=(pl.cdiv(NC, blk),),
            in_specs=[
                pl.BlockSpec((blk, H, W), lambda i: (i, 0, 0)),
                pl.BlockSpec((R, H, Ho), lambda i: (0, 0, 0)),
                pl.BlockSpec((R, W, Wo), lambda i: (0, 0, 0)),
            ],
            out_specs=pl.BlockSpec((blk, Ho, Wo), lambda i: (i, 0, 0)),
        ),
        compiler_params=pltpu.CompilerParams(
            dimension_semantics=("parallel",),
            vmem_limit_bytes=vmem_limit,
        ),
    )(x3, a_t, b)
    return out.reshape(N, C, Ho, Wo)


# --------------------------------------------------------------------------- reference


def _reference_downsample(x, fir_kernel, factor=2):
    """Pure-JAX reference (upfirdn2d_native with up=1, down=factor)."""
    N, C, H, W = x.shape
    k = jnp.asarray(fir_kernel, jnp.float32)
    KH, KW = k.shape
    p = KH - factor
    pad0, pad1 = (p + 1) // 2, p // 2
    xp = jnp.pad(x.reshape(N * C, 1, H, W).astype(jnp.float32),
                 ((0, 0), (0, 0), (pad0, pad1), (pad0, pad1)))
    w = jnp.flip(k, axis=(0, 1))[None, None]
    out = jax.lax.conv_general_dilated(xp, w, window_strides=(factor, factor),
                                       padding="VALID")
    return out.reshape(N, C, out.shape[-2], out.shape[-1])


if __name__ == "__main__":
    fir = make_fir_kernel([1.0, 3.0, 3.0, 1.0])   # (4, 4), sums to 1
    key0, key1 = jax.random.split(jax.random.PRNGKey(0))

    # Path 1: small spatial -> fused single-matmul kernel (lane-dense flat output).
    N, C, H, W = 2, 4, 16, 16
    x = jax.random.normal(key0, (N, C, H, W), dtype=jnp.float32)
    out = jax.block_until_ready(downsample(x, fir, factor=2))
    ref = _reference_downsample(x, fir, factor=2)
    assert out.shape == (N, C, H // 2, W // 2), out.shape
    assert jnp.allclose(out, ref, atol=1e-4, rtol=1e-4), "mismatch (fused path)"

    # Path 2: larger spatial -> two-stage flat-matmul kernel.
    x_big = jax.random.normal(key1, (1, 2, 64, 64), dtype=jnp.float32)
    out_big = jax.block_until_ready(downsample(x_big, fir, factor=2))
    ref_big = _reference_downsample(x_big, fir, factor=2)
    assert out_big.shape == (1, 2, 32, 32), out_big.shape
    assert jnp.allclose(out_big, ref_big, atol=1e-4, rtol=1e-4), "mismatch (two-stage path)"

    print("KERNEL_OK")
</pallas_src>

<mosaic_0001>
module attributes {stable_mosaic.version = 11 : i64} {
  func.func @_downsample_fused_kernel(%arg0: i32, %arg1: memref<8x256xf32, #tpu.memory_space<vmem>>, %arg2: memref<256x64xf32, #tpu.memory_space<vmem>>, %arg3: memref<8x64xf32, #tpu.memory_space<vmem>>) attributes {dimension_semantics = [#tpu.dimension_semantics<parallel>], iteration_bounds = array<i64: 1>, scalar_prefetch = 0 : i64, scratch_operands = 0 : i64, tpu.core_type = #tpu.core_type<tc>, window_params = [{transform_indices = @transform_0, window_bounds = array<i64: 8, 256>}, {pipeline_mode = #tpu.pipeline_mode<synchronous>, transform_indices = @transform_1, window_bounds = array<i64: 256, 64>}, {transform_indices = @transform_2, window_bounds = array<i64: 8, 64>}]} {
    %c0 = arith.constant 0 : index
    %c0_0 = arith.constant 0 : index
    %0 = vector.load %arg1[%c0, %c0_0] : memref<8x256xf32, #tpu.memory_space<vmem>>, vector<8x256xf32>
    %c0_1 = arith.constant 0 : index
    %c0_2 = arith.constant 0 : index
    %1 = vector.load %arg2[%c0_1, %c0_2] : memref<256x64xf32, #tpu.memory_space<vmem>>, vector<256x64xf32>
    %cst = arith.constant dense<0.000000e+00> : vector<8x64xf32>
    %2 = tpu.matmul %0, %1, %cst {dimension_numbers = #tpu.dot_dimension_numbers<[1], [0], [0], [1], [0, 0, 1, 1], [], []>} : vector<8x256xf32>, vector<256x64xf32>, vector<8x64xf32> -> vector<8x64xf32>
    %c0_3 = arith.constant 0 : index
    %c0_4 = arith.constant 0 : index
    %3 = vector.load %arg3[%c0_3, %c0_4] : memref<8x64xf32, #tpu.memory_space<vmem>>, vector<8x64xf32>
    tpu.vector_store %arg3[%c0_3, %c0_4], %2 {strides = array<i32>} : memref<8x64xf32, #tpu.memory_space<vmem>>, vector<8x64xf32>,
    return
  }
  func.func @transform_0(%arg0: i32) -> (i32, i32) {
    %c0_i32 = arith.constant 0 : i32
    %c0_i32_0 = arith.constant 0 : i32
    return %arg0, %c0_i32 : i32, i32
  }
  func.func @transform_1(%arg0: i32) -> (i32, i32) {
    %c0_i32 = arith.constant 0 : i32
    %c0_i32_0 = arith.constant 0 : i32
    %c0_i32_1 = arith.constant 0 : i32
    return %c0_i32, %c0_i32_0 : i32, i32
  }
  func.func @transform_2(%arg0: i32) -> (i32, i32) {
    %c0_i32 = arith.constant 0 : i32
    %c0_i32_0 = arith.constant 0 : i32
    return %arg0, %c0_i32 : i32, i32
  }
}

</mosaic_0001>

<bundles_post_ra>
// kernel: tpu_custom_call.1
= control target key start
LH: loop header
LB: loop body
LE: loop exit
PB: predicated region body
PF: predicated region fallthrough
CT: control target
= control target key end

     0   :  { %s354_s0 = inlined_call_operand.vmem [shape: f32[8,256], index: 0, kind: input, shape index: {}]   ;;  %s355_s1 = inlined_call_operand.vmem [shape: f32[256,64], index: 1, kind: input, shape index: {}]   ;;  %s356_s2 = inlined_call_operand.hbm [shape: f32[8,64], index: 2, kind: output, shape index: {}]  }
   0x1   :  { %v30_v0 = vld [vmem:[%s355_s1 + $0x80] sm:$0xff]  ;;  %v31_v1 = vld [vmem:[%s355_s1 + $0x88] sm:$0xff]  ;;  %v32_v5 = vld [vmem:[%s355_s1 + $0x90] sm:$0xff] }
   0x2   :  { %v14_v2 = vld [vmem:[%s355_s1] sm:$0xff]  ;;  %v167_v3 = vpack.c.bf16 %v31_v1, %v30_v0  ;;  %v15_v4 = vld [vmem:[%s355_s1 + $0x8] sm:$0xff]  ;;  %v33_v6 = vld [vmem:[%s355_s1 + $0x98] sm:$0xff] }
   0x3   :  { %v169_v7 = vpack.c.bf16 %v15_v4, %v14_v2  ;;  %v171_v8 = vpack.c.bf16 %v33_v6, %v32_v5  ;;  %v16_v9 = vld [vmem:[%s355_s1 + $0x10] sm:$0xff]  ;;  %v17_v10 = vld [vmem:[%s355_s1 + $0x18] sm:$0xff]  ;;  %v34_v11 = vld [vmem:[%s355_s1 + $0xa0] sm:$0xff] }
   0x4   :  { %168 = vmatprep.subr.bf16.mxu0 %v167_v3  ;;  %v35_v12 = vld [vmem:[%s355_s1 + $0xa8] sm:$0xff]  ;;  %v173_v13 = vpack.c.bf16 %v17_v10, %v16_v9  ;;  %v18_v15 = vld [vmem:[%s355_s1 + $0x20] sm:$0xff]  ;;  %v36_v17 = vld [vmem:[%s355_s1 + $0xb0] sm:$0xff] }
   0x5   :  { %170 = vmatpush3.bf16.msra.mxu0 %v169_v7  ;;  %v175_v14 = vpack.c.bf16 %v35_v12, %v34_v11  ;;  %v19_v16 = vld [vmem:[%s355_s1 + $0x28] sm:$0xff]  ;;  %v37_v18 = vld [vmem:[%s355_s1 + $0xb8] sm:$0xff]  ;;  %v20_v21 = vld [vmem:[%s355_s1 + $0x30] sm:$0xff] }
   0x6   :  { %172 = vmatprep.subr.bf16.mxu0 %v171_v8  ;;  %v177_v19 = vpack.c.bf16 %v19_v16, %v18_v15  ;;  %v179_v20 = vpack.c.bf16 %v37_v18, %v36_v17  ;;  %v21_v22 = vld [vmem:[%s355_s1 + $0x38] sm:$0xff]  ;;  %v38_v23 = vld [vmem:[%s355_s1 + $0xc0] sm:$0xff]  ;;  %v39_v24 = vld [vmem:[%s355_s1 + $0xc8] sm:$0xff] }
   0x7   :  { %v13_v25 = vld [vmem:[%s354_s0 + $0x8] sm:$0xff] }
   0x8   :  { %110 = vmatprep.mubr.f32.mxu0 %v13_v25 }
   0x9   :  { %174 = vmatpush3.bf16.msra.mxu0 %v173_v13 }
   0xa   :  { %176 = vmatprep.subr.bf16.mxu0 %v175_v14 }
   0xb   :  { %7 = vsyncpa [#allocation3], 0  ;;  %v181_v26 = vpack.c.bf16 %v21_v22, %v20_v21  ;;  %v183_v27 = vpack.c.bf16 %v39_v24, %v38_v23  ;;  %v22_v28 = vld [vmem:[%s355_s1 + $0x40] sm:$0xff]  ;;  %v23_v29 = vld [vmem:[%s355_s1 + $0x48] sm:$0xff]  ;;  %s224_s21 = smov [#allocation2]   ;;  %vm116_vm0 = vcmask 523264  }
   0xc   :  { %v40_v30 = vld [vmem:[%s355_s1 + $0xd0] sm:$0xff]  ;;  %v41_v31 = vld [vmem:[%s355_s1 + $0xd8] sm:$0xff]  ;;  %v185_v32 = vpack.c.bf16 %v23_v29, %v22_v28  ;;  %v42_v36 = vld [vmem:[%s355_s1 + $0xe0] sm:$0xff]  ;;  %s124_s22 = sshll.u32 %s224_s21, 4  ;;  %s125_s22 = int_to_ptr.vmem [resolvable:$true] %s124_s22 }
   0xd   :  { %178 = vmatpush3.bf16.msra.mxu0 %v177_v19  ;;  %v187_v33 = vpack.c.bf16 %v41_v31, %v40_v30  ;;  %v24_v34 = vld [vmem:[%s355_s1 + $0x50] sm:$0xff]  ;;  %v25_v35 = vld [vmem:[%s355_s1 + $0x58] sm:$0xff]  ;;  %v43_v37 = vld [vmem:[%s355_s1 + $0xe8] sm:$0xff]  ;;  %s200_s23 = scalar_lea.vmem %s125_s22, 128  ;;  %p205_p1 = scmp.lt.s32.totalorder %s125_s22, %s125_s22 }
   0xe   :  { %180 = vmatprep.subr.bf16.mxu0 %v179_v20  ;;  %v189_v38 = vpack.c.bf16 %v25_v35, %v24_v34  ;;  %v191_v39 = vpack.c.bf16 %v43_v37, %v42_v36  ;;  %v26_v40 = vld [vmem:[%s355_s1 + $0x60] sm:$0xff]  ;;  %v27_v41 = vld [vmem:[%s355_s1 + $0x68] sm:$0xff]  ;;  %v44_v42 = vld [vmem:[%s355_s1 + $0xf0] sm:$0xff]  ;;  %p201_p0 = scmp.ne.s32.totalorder %s125_s22, %s200_s23  ;;  %p206_p2 = scmp.lt.s32.totalorder %s200_s23, %s200_s23 }
   0xf   :  { %v45_v43 = vld [vmem:[%s355_s1 + $0xf8] sm:$0xff]  ;;  %v193_v44 = vpack.c.bf16 %v27_v41, %v26_v40  ;;  %v28_v46 = vld [vmem:[%s355_s1 + $0x70] sm:$0xff]  ;;  %v12_v49 = vld [vmem:[%s354_s0] sm:$0xff] }
  0x10   :  { %v195_v45 = vpack.c.bf16 %v45_v43, %v44_v42  ;;  %v29_v47 = vld [vmem:[%s355_s1 + $0x78] sm:$0xff]  ;;  %p207_p3 = por %p206_p2, %p205_p1 }
  0x11   :  { %182 = vmatpush3.bf16.msra.mxu0 %v181_v26  ;;  %v197_v48 = vpack.c.bf16 %v29_v47, %v28_v46 }
  0x12   :  { %184 = vmatprep.subr.bf16.mxu0 %v183_v27  ;;  %p208_p4 = pnand %p207_p3, %p201_p0 }
  0x15   :  { %186 = vmatpush3.bf16.msra.mxu0 %v185_v32 }
  0x16   :  { %188 = vmatprep.subr.bf16.mxu0 %v187_v33 }
  0x19   :  { %190 = vmatpush3.bf16.msra.mxu0 %v189_v38 }
  0x1a   :  { %192 = vmatprep.subr.bf16.mxu0 %v191_v39 }
  0x1d   :  { %194 = vmatpush3.bf16.msra.mxu0 %v193_v44 }
  0x1e   :  { %196 = vmatprep.subr.bf16.mxu0 %v195_v45 }
  0x21   :  { %198 = vmatpush3.bf16.msra.mxu0 %v197_v48 }
  0x24   :  { %111 = vmatmul.mubr.f32.vlgmr.msra.gmra.mrb[0].mxu0 %v12_v49 }
  0xf7   :  { %v164_v50 = vpop.f32.mrb[0].mxu0 }
  0xf8   :  { %v165_v51 = vpop.f32.mrb[1].mxu0 }
  0xf9   :  { %v166_v52 = vadd.f32 %v165_v51, %v164_v50 }
  0xfb   :  { %117 = vst.msk [vmem:[#allocation2] sm:$0xff] %vm116_vm0, %v166_v52 }
  0xfc   :  { %211 = shalt.err (!%p208_p4)
}
  0xfd   :  { %s212_s0 = scalar_lea.hbm %s356_s2, 128 }
  0xfe   :  { %p213_p5 = scmp.ne.s32.totalorder %s356_s2, %s212_s0  ;;  %p216_p6 = scmp.lt.u32.totalorder %s212_s0, %s356_s2 }
 0x100   :  { %p218_p7 = pnand %p216_p6, %p213_p5 }
 0x102   :  { %221 = shalt.err (!%p218_p7)
}
 0x103   :  { %127 = dma.vmem_to_hbm [thread:$0]  %s125_s22, 128, %s356_s2, [#allocation3]  }
 0x104   :  { %222 = dma.done.wait [#allocation3], 128  }
 0x105   :  { %223 = vsyncadd [#allocation3], 4294967168 }
 0x106   :  { %131 = vsyncpa [#allocation3], 1 }

</bundles_post_ra>
